<compile_context>
chip_gen: v6e
topology: v6e:2x2x1
jax: 0.10.0
libtpu: 0.0.40
codegen_flags: <defaults>
</compile_context>

<pallas_src>
import functools

import jax
import jax.numpy as jnp
from jax.experimental import pallas as pl
from jax.experimental.pallas import tpu as pltpu

MODEL_DTYPE = jnp.bfloat16


def _round_up(x, m):
    return (x + m - 1) // m * m


def _vmem_estimate_bytes(tm, H, ic, dtype_bytes=2):
    """Rough double-buffered VMEM working set of the MoE kernel."""
    x_b = 2 * tm * H * dtype_bytes            # token tile (double buffered)
    rt_b = 2 * tm * 4                         # (tm, 1) f32 routing weights
    w_b = 2 * 3 * H * ic * dtype_bytes        # w1/w3/w2 chunks (double buffered)
    out_b = 2 * tm * H * dtype_bytes          # output tile (double buffered)
    acc_b = tm * H * 4                        # f32 accumulator scratch
    return x_b + rt_b + w_b + out_b + acc_b


def _pick_i_chunk(I, tm, H, budget_bytes):
    """Largest I-chunk (divisor of I, multiple of 128 or == I) whose working set fits."""
    cands = {I}
    c = 128
    while c < I:
        if I % c == 0:
            cands.add(c)
        c += 128
    for c in sorted(cands, reverse=True):
        if _vmem_estimate_bytes(tm, H, c) <= budget_bytes:
            return c
    return min(cands)


# --------------------------- Pallas kernel -----------------------------------

def moe_kernel(tile_expert_ref, tile_valid_ref, tile_row_ref,   # scalar prefetch (SMEM)
               x_ref, route_ref, w1_ref, w3_ref, w2_ref,        # VMEM inputs
               o_ref, acc_ref):                                 # output + scratch
    i = pl.program_id(0)          # row (assignment) tile
    c = pl.program_id(1)          # I-chunk (reduction axis)
    n_c = pl.num_programs(1)

    @pl.when(c == 0)
    def _():
        acc_ref[...] = jnp.zeros_like(acc_ref)

    # Real tiles only.  Dead (capacity-padding) tiles skip all compute; their block
    # indices are clamped in the index_maps to the last real grid step so they also
    # issue no new DMAs.
    @pl.when(tile_valid_ref[i] > 0)
    def _():
        x = x_ref[...]             # (tm, H)  bf16, all rows routed to one expert
        w1 = w1_ref[0]             # (H, ic)
        w3 = w3_ref[0]             # (H, ic)
        w2 = w2_ref[0]             # (ic, H)
        h1 = jnp.dot(x, w1, preferred_element_type=jnp.float32)
        h3 = jnp.dot(x, w3, preferred_element_type=jnp.float32)
        # Routing weight applied on the (tm, ic) intermediate, not the (tm, H) output.
        h = (jax.nn.silu(h1) * h3) * route_ref[...]
        acc_ref[...] += jnp.dot(h.astype(w2.dtype), w2,
                                preferred_element_type=jnp.float32)

    @pl.when(c == n_c - 1)
    def _():
        o_ref[...] = acc_ref[...].astype(o_ref.dtype)


# --------------------------- wrapper ------------------------------------------

def phimoe_sparse_moe_block(hidden_states, gate_w, w1s, w3s, w2s, *,
                            top_k=2, tm=512, i_chunk=None,
                            vmem_budget_bytes=80 * 1024 * 1024):
    """hidden_states: (B, S, H); gate_w: (E, H); w1s/w3s: (E, H, I); w2s: (E, I, H).

    For v7x (64 MiB VMEM/TC) pass vmem_budget_bytes ~= 44*2**20 so the auto-picked
    I-chunk fits; v5e/v6e (128 MiB) can keep the default.
    """
    B, S, H = hidden_states.shape
    T = B * S
    E = gate_w.shape[0]
    I = w1s.shape[-1]
    dtype = hidden_states.dtype
    A = T * top_k                                     # total (token, expert) assignments

    x = hidden_states.reshape(T, H)

    # ---- router: gate 1x1 conv == linear, plus softmax / top-k glue (XLA) ----------
    # TODO(synk): per-row top-k and the expert sort have no clean Pallas TPU mapping;
    # kept as XLA glue together with the E(<128)-lane gate matmul.
    logits = jnp.dot(x, jnp.transpose(gate_w), preferred_element_type=jnp.float32)
    probs = jax.nn.softmax(logits, axis=-1)
    topv, topi = jax.lax.top_k(probs, top_k)
    topv = topv / jnp.sum(topv, axis=-1, keepdims=True)

    # ---- tiling choices --------------------------------------------------------------
    tm = max(16, min(_round_up(tm, 16), _round_up(A, 16)))
    if tm >= 256:
        tm = (tm // 256) * 256                        # clean 256-wide MXU row tiles
    ic = _pick_i_chunk(I, tm, H, vmem_budget_bytes) if i_chunk is None else i_chunk
    assert I % ic == 0 and (ic % 128 == 0 or ic == I)
    nic = I // ic

    A_cap = _round_up(A, tm) + E * tm                 # static capacity of padded layout
    nt_a = A_cap // tm

    # ---- grouped-GEMM permutation: sort assignments by expert ------------------------
    e_flat = topi.reshape(A).astype(jnp.int32)
    w_flat = topv.reshape(A).astype(jnp.float32)
    tok_flat = jnp.arange(A, dtype=jnp.int32) // top_k

    order = jnp.argsort(e_flat)                       # assignment ids sorted by expert
    sorted_e = e_flat[order]
    g = jnp.bincount(e_flat, length=E)                # (E,) assignments per expert
    g_pad = ((g + tm - 1) // tm) * tm                 # padded to row-tile multiples
    ustart = jnp.cumsum(g) - g                        # exclusive cumsums
    pstart = jnp.cumsum(g_pad) - g_pad
    jidx = jnp.arange(A, dtype=jnp.int32)
    dest = (pstart[sorted_e] + (jidx - ustart[sorted_e])).astype(jnp.int32)

    src_tok = jnp.full((A_cap,), T, jnp.int32).at[dest].set(tok_flat[order])
    w_sorted = jnp.zeros((A_cap,), jnp.float32).at[dest].set(w_flat[order])
    x_ext = jnp.concatenate([x, jnp.zeros((1, H), x.dtype)], axis=0)  # row T == zeros
    x_sorted = x_ext[src_tok]                         # (A_cap, H) expert-sorted tokens
    route_sorted = w_sorted[:, None]                  # (A_cap, 1); 0 on padding rows

    # ---- per-tile metadata (scalar prefetch, SMEM) ------------------------------------
    tiles_per_e = g_pad // tm
    tile_end = jnp.cumsum(tiles_per_e)                # (E,) exclusive tile-range ends
    n_real = tile_end[-1]                             # number of real (non-dead) tiles
    tile_idx = jnp.arange(nt_a, dtype=jnp.int32)
    te_raw = jnp.searchsorted(tile_end, tile_idx, side='right').astype(jnp.int32)
    valid = tile_idx < n_real
    last_tile = jnp.maximum(n_real - 1, 0).astype(jnp.int32)
    last_e = te_raw[last_tile]
    tile_expert = jnp.where(valid, jnp.minimum(te_raw, E - 1), last_e).astype(jnp.int32)
    tile_valid = valid.astype(jnp.int32)
    tile_row = jnp.where(valid, tile_idx, last_tile).astype(jnp.int32)

    # Dead tiles re-request exactly the block indices of the final real grid step
    # (same row block, same expert, last I-chunk) -> the pipeline issues no DMA.
    def _c_eff(c, tv_i):
        return c * tv_i + (nic - 1) * (1 - tv_i)      # tv_i in {0, 1}

    grid_spec = pltpu.PrefetchScalarGridSpec(
        num_scalar_prefetch=3,
        grid=(nt_a, nic),
        in_specs=[
            pl.BlockSpec((tm, H), lambda i, c, te, tv, tr: (tr[i], 0)),        # tokens
            pl.BlockSpec((tm, 1), lambda i, c, te, tv, tr: (tr[i], 0)),        # weights
            pl.BlockSpec((1, H, ic),
                         lambda i, c, te, tv, tr: (te[i], 0, _c_eff(c, tv[i]))),  # w1
            pl.BlockSpec((1, H, ic),
                         lambda i, c, te, tv, tr: (te[i], 0, _c_eff(c, tv[i]))),  # w3
            pl.BlockSpec((1, ic, H),
                         lambda i, c, te, tv, tr: (te[i], _c_eff(c, tv[i]), 0)),  # w2
        ],
        out_specs=pl.BlockSpec((tm, H), lambda i, c, te, tv, tr: (i, 0)),
        scratch_shapes=[pltpu.VMEM((tm, H), jnp.float32)],
    )

    vmem_limit = int(min(100 * 2**20,
                         max(32 * 2**20, int(1.3 * _vmem_estimate_bytes(tm, H, ic)))))

    out_sorted = pl.pallas_call(
        moe_kernel,
        out_shape=jax.ShapeDtypeStruct((A_cap, H), dtype),
        grid_spec=grid_spec,
        compiler_params=pltpu.CompilerParams(
            dimension_semantics=("parallel", "arbitrary"),
            vmem_limit_bytes=vmem_limit),
        # TODO(synk): further v5e win: weight-stationary loop order (expert/I-chunk
        # outer) or int8 weights to cut weight re-streaming; on v7x,
        # pipeline_mode=pl.Buffered(1) on the x/route specs reclaims ~tm*H*2 bytes.
    )(tile_expert, tile_valid, tile_row, x_sorted, route_sorted, w1s, w3s, w2s)

    # ---- unpermute: gather each assignment's row, sum the top_k contributions ---------
    row_of_a = jnp.zeros((A,), jnp.int32).at[order].set(dest)
    out_assign = out_sorted[row_of_a].astype(jnp.float32)        # (A, H)
    final = out_assign.reshape(T, top_k, H).sum(axis=1).astype(dtype)
    return final.reshape(B, S, H)


# --------------------------- pure-JAX reference --------------------------------

def reference(hidden_states, gate_w, w1s, w3s, w2s, top_k=2):
    B, S, H = hidden_states.shape
    T = B * S
    E = gate_w.shape[0]
    x = hidden_states.reshape(T, H).astype(jnp.float32)
    logits = x @ gate_w.T.astype(jnp.float32)
    probs = jax.nn.softmax(logits, -1)
    topv, topi = jax.lax.top_k(probs, top_k)
    topv = topv / topv.sum(-1, keepdims=True)
    route = jnp.zeros((T, E)).at[jnp.arange(T)[:, None], topi].add(topv)
    out = jnp.zeros((T, H))
    for e in range(E):
        h1 = x @ w1s[e].astype(jnp.float32)
        h3 = x @ w3s[e].astype(jnp.float32)
        eo = (jax.nn.silu(h1) * h3) @ w2s[e].astype(jnp.float32)
        out = out + eo * route[:, e:e + 1]
    return out.reshape(B, S, H)


# --------------------------- main -----------------------------------------------

if __name__ == "__main__":
    # Small config consistent with PhimoeConfig fields:
    # hidden_size=64, intermediate_size=128, num_local_experts=8, num_experts_per_tok=2
    B, S, H, I, E, TOP_K = 2, 8, 64, 128, 8, 2

    key = jax.random.PRNGKey(0)
    k_x, k_g, k_w1, k_w3, k_w2 = jax.random.split(key, 5)

    hidden_states = jax.random.normal(k_x, (B, S, H), jnp.float32).astype(MODEL_DTYPE)
    init_scale = 0.02
    gate_w = (init_scale * jax.random.normal(k_g, (E, H), jnp.float32)).astype(MODEL_DTYPE)
    w1s = (init_scale * jax.random.normal(k_w1, (E, H, I), jnp.float32)).astype(MODEL_DTYPE)
    w3s = (init_scale * jax.random.normal(k_w3, (E, H, I), jnp.float32)).astype(MODEL_DTYPE)
    w2s = (init_scale * jax.random.normal(k_w2, (E, I, H), jnp.float32)).astype(MODEL_DTYPE)

    fn = jax.jit(functools.partial(phimoe_sparse_moe_block, top_k=TOP_K))
    out = jax.block_until_ready(fn(hidden_states, gate_w, w1s, w3s, w2s))

    assert out.shape == (B, S, H)
    assert out.dtype == MODEL_DTYPE

    ref = reference(hidden_states, gate_w, w1s, w3s, w2s, top_k=TOP_K)
    assert jnp.all(jnp.isfinite(out.astype(jnp.float32)))
    assert jnp.allclose(out.astype(jnp.float32), ref, atol=1e-2, rtol=1e-2)

    print("KERNEL_OK")
</pallas_src>

<mosaic_0001>
module attributes {stable_mosaic.version = 11 : i64} {
  func.func private @main(%arg0: i32) attributes {dimension_semantics = [#tpu.dimension_semantics<core_parallel>], iteration_bounds = array<i64: 2>, tpu.core_type = #tpu.core_type<sc_scalar_subcore>, window_params = []} {
    return
  }
}

module attributes {stable_mosaic.version = 11 : i64} {
  func.func private @main(%arg0: i32) attributes {dimension_semantics = [#tpu.dimension_semantics<core_parallel>], iteration_bounds = array<i64: 2>, tpu.core_type = #tpu.core_type<sc_scalar_subcore>, window_params = []} {
    return
  }
}

module attributes {stable_mosaic.version = 11 : i64} {
  func.func @moe_kernel(%arg0: i32, %arg1: i32, %arg2: memref<9xi32, #tpu.memory_space<smem>>, %arg3: memref<9xi32, #tpu.memory_space<smem>>, %arg4: memref<9xi32, #tpu.memory_space<smem>>, %arg5: memref<32x64xbf16, #tpu.memory_space<vmem>>, %arg6: memref<32x1xf32, #tpu.memory_space<vmem>>, %arg7: memref<1x64x128xbf16, #tpu.memory_space<vmem>>, %arg8: memref<1x64x128xbf16, #tpu.memory_space<vmem>>, %arg9: memref<1x128x64xbf16, #tpu.memory_space<vmem>>, %arg10: memref<32x64xbf16, #tpu.memory_space<vmem>>, %arg11: memref<32x64xf32, #tpu.memory_space<vmem>>) attributes {dimension_semantics = [#tpu.dimension_semantics<parallel>, #tpu.dimension_semantics<arbitrary>], iteration_bounds = array<i64: 9, 1>, scalar_prefetch = 3 : i64, scratch_operands = 1 : i64, tpu.core_type = #tpu.core_type<tc>, window_params = [{transform_indices = @transform_0, window_bounds = array<i64: 32, 64>}, {transform_indices = @transform_1, window_bounds = array<i64: 32, 1>}, {transform_indices = @transform_2, window_bounds = array<i64: 1, 64, 128>}, {transform_indices = @transform_3, window_bounds = array<i64: 1, 64, 128>}, {transform_indices = @transform_4, window_bounds = array<i64: 1, 128, 64>}, {transform_indices = @transform_5, window_bounds = array<i64: 32, 64>}]} {
    %c0_i32 = arith.constant 0 : i32
    %0 = arith.cmpi eq, %arg1, %c0_i32 : i32
    %1 = arith.extui %0 : i1 to i32
    %c0_i32_0 = arith.constant 0 : i32
    %2 = arith.cmpi ne, %1, %c0_i32_0 : i32
    scf.if %2 {
      %cst = arith.constant 0.000000e+00 : f32
      %11 = vector.broadcast %cst : f32 to vector<32x64xf32>
      %c0 = arith.constant 0 : index
      %c0_5 = arith.constant 0 : index
      %12 = vector.load %arg11[%c0, %c0_5] : memref<32x64xf32, #tpu.memory_space<vmem>>, vector<32x64xf32>
      tpu.vector_store %arg11[%c0, %c0_5], %11 {strides = array<i32>} : memref<32x64xf32, #tpu.memory_space<vmem>>, vector<32x64xf32>,
    } else {
    }
    %3 = arith.index_cast %arg0 : i32 to index
    %4 = memref.load %arg3[%3] : memref<9xi32, #tpu.memory_space<smem>>
    %c0_i32_1 = arith.constant 0 : i32
    %5 = arith.cmpi sgt, %4, %c0_i32_1 : i32
    %6 = arith.extui %5 : i1 to i32
    %c0_i32_2 = arith.constant 0 : i32
    %7 = arith.cmpi ne, %6, %c0_i32_2 : i32
    scf.if %7 {
      %c0 = arith.constant 0 : index
      %c0_5 = arith.constant 0 : index
      %11 = vector.load %arg5[%c0, %c0_5] : memref<32x64xbf16, #tpu.memory_space<vmem>>, vector<32x64xbf16>
      %c0_6 = arith.constant 0 : index
      %c0_7 = arith.constant 0 : index
      %c0_8 = arith.constant 0 : index
      %12 = vector.load %arg7[%c0_6, %c0_7, %c0_8] : memref<1x64x128xbf16, #tpu.memory_space<vmem>>, vector<1x64x128xbf16>
      %13 = vector.shape_cast %12 : vector<1x64x128xbf16> to vector<64x128xbf16>
      %c0_9 = arith.constant 0 : index
      %c0_10 = arith.constant 0 : index
      %c0_11 = arith.constant 0 : index
      %14 = vector.load %arg8[%c0_9, %c0_10, %c0_11] : memref<1x64x128xbf16, #tpu.memory_space<vmem>>, vector<1x64x128xbf16>
      %15 = vector.shape_cast %14 : vector<1x64x128xbf16> to vector<64x128xbf16>
      %c0_12 = arith.constant 0 : index
      %c0_13 = arith.constant 0 : index
      %c0_14 = arith.constant 0 : index
      %16 = vector.load %arg9[%c0_12, %c0_13, %c0_14] : memref<1x128x64xbf16, #tpu.memory_space<vmem>>, vector<1x128x64xbf16>
      %17 = vector.shape_cast %16 : vector<1x128x64xbf16> to vector<128x64xbf16>
      %cst = arith.constant dense<0.000000e+00> : vector<32x128xf32>
      %18 = tpu.matmul %11, %13, %cst {dimension_numbers = #tpu.dot_dimension_numbers<[1], [0], [0], [1], [0, 0, 1, 1], [], []>} : vector<32x64xbf16>, vector<64x128xbf16>, vector<32x128xf32> -> vector<32x128xf32>
      %cst_15 = arith.constant dense<0.000000e+00> : vector<32x128xf32>
      %19 = tpu.matmul %11, %15, %cst_15 {dimension_numbers = #tpu.dot_dimension_numbers<[1], [0], [0], [1], [0, 0, 1, 1], [], []>} : vector<32x64xbf16>, vector<64x128xbf16>, vector<32x128xf32> -> vector<32x128xf32>
      %20 = arith.negf %18 : vector<32x128xf32>
      %21 = math.exp %20 : vector<32x128xf32>
      %cst_16 = arith.constant 1.000000e+00 : f32
      %22 = vector.broadcast %cst_16 : f32 to vector<32x128xf32>
      %23 = arith.addf %22, %21 : vector<32x128xf32>
      %24 = arith.divf %22, %23 : vector<32x128xf32>
      %25 = arith.mulf %18, %24 : vector<32x128xf32>
      %26 = arith.mulf %25, %19 : vector<32x128xf32>
      %c0_17 = arith.constant 0 : index
      %c0_18 = arith.constant 0 : index
      %27 = vector.load %arg6[%c0_17, %c0_18] : memref<32x1xf32, #tpu.memory_space<vmem>>, vector<32x1xf32>
      %28 = vector.broadcast %27 : vector<32x1xf32> to vector<32x128xf32>
      %29 = arith.mulf %26, %28 : vector<32x128xf32>
      %c0_19 = arith.constant 0 : index
      %c0_20 = arith.constant 0 : index
      %30 = vector.load %arg11[%c0_19, %c0_20] : memref<32x64xf32, #tpu.memory_space<vmem>>, vector<32x64xf32>
      %31 = arith.truncf %29 : vector<32x128xf32> to vector<32x128xbf16>
      %cst_21 = arith.constant dense<0.000000e+00> : vector<32x64xf32>
      %32 = tpu.matmul %31, %17, %cst_21 {dimension_numbers = #tpu.dot_dimension_numbers<[1], [0], [0], [1], [0, 0, 1, 1], [], []>} : vector<32x128xbf16>, vector<128x64xbf16>, vector<32x64xf32> -> vector<32x64xf32>
      %33 = arith.addf %30, %32 : vector<32x64xf32>
      %c0_22 = arith.constant 0 : index
      %c0_23 = arith.constant 0 : index
      %34 = vector.load %arg11[%c0_22, %c0_23] : memref<32x64xf32, #tpu.memory_space<vmem>>, vector<32x64xf32>
      tpu.vector_store %arg11[%c0_22, %c0_23], %33 {strides = array<i32>} : memref<32x64xf32, #tpu.memory_space<vmem>>, vector<32x64xf32>,
    } else {
    }
    %c0_i32_3 = arith.constant 0 : i32
    %8 = arith.cmpi eq, %arg1, %c0_i32_3 : i32
    %9 = arith.extui %8 : i1 to i32
    %c0_i32_4 = arith.constant 0 : i32
    %10 = arith.cmpi ne, %9, %c0_i32_4 : i32
    scf.if %10 {
      %c0 = arith.constant 0 : index
      %c0_5 = arith.constant 0 : index
      %11 = vector.load %arg11[%c0, %c0_5] : memref<32x64xf32, #tpu.memory_space<vmem>>, vector<32x64xf32>
      %12 = arith.truncf %11 : vector<32x64xf32> to vector<32x64xbf16>
      %c0_6 = arith.constant 0 : index
      %c0_7 = arith.constant 0 : index
      %13 = vector.load %arg10[%c0_6, %c0_7] : memref<32x64xbf16, #tpu.memory_space<vmem>>, vector<32x64xbf16>
      tpu.vector_store %arg10[%c0_6, %c0_7], %12 {strides = array<i32>} : memref<32x64xbf16, #tpu.memory_space<vmem>>, vector<32x64xbf16>,
    } else {
    }
    return
  }
  func.func @transform_0(%arg0: i32, %arg1: i32, %arg2: memref<9xi32, #tpu.memory_space<smem>>, %arg3: memref<9xi32, #tpu.memory_space<smem>>, %arg4: memref<9xi32, #tpu.memory_space<smem>>) -> (i32, i32) {
    %0 = arith.index_cast %arg0 : i32 to index
    %1 = memref.load %arg4[%0] : memref<9xi32, #tpu.memory_space<smem>>
    %c0_i32 = arith.constant 0 : i32
    %c0_i32_0 = arith.constant 0 : i32
    return %1, %c0_i32 : i32, i32
  }
  func.func @transform_1(%arg0: i32, %arg1: i32, %arg2: memref<9xi32, #tpu.memory_space<smem>>, %arg3: memref<9xi32, #tpu.memory_space<smem>>, %arg4: memref<9xi32, #tpu.memory_space<smem>>) -> (i32, i32) {
    %0 = arith.index_cast %arg0 : i32 to index
    %1 = memref.load %arg4[%0] : memref<9xi32, #tpu.memory_space<smem>>
    %c0_i32 = arith.constant 0 : i32
    %c0_i32_0 = arith.constant 0 : i32
    return %1, %c0_i32 : i32, i32
  }
  func.func @transform_2(%arg0: i32, %arg1: i32, %arg2: memref<9xi32, #tpu.memory_space<smem>>, %arg3: memref<9xi32, #tpu.memory_space<smem>>, %arg4: memref<9xi32, #tpu.memory_space<smem>>) -> (i32, i32, i32) {
    %0 = arith.index_cast %arg0 : i32 to index
    %1 = memref.load %arg2[%0] : memref<9xi32, #tpu.memory_space<smem>>
    %2 = arith.index_cast %arg0 : i32 to index
    %3 = memref.load %arg3[%2] : memref<9xi32, #tpu.memory_space<smem>>
    %4 = arith.muli %arg1, %3 : i32
    %c1_i32 = arith.constant 1 : i32
    %5 = arith.subi %c1_i32, %3 : i32
    %c0_i32 = arith.constant 0 : i32
    %6 = arith.muli %c0_i32, %5 : i32
    %7 = arith.addi %4, %6 : i32
    %c0_i32_0 = arith.constant 0 : i32
    %c0_i32_1 = arith.constant 0 : i32
    return %1, %c0_i32_0, %7 : i32, i32, i32
  }
  func.func @transform_3(%arg0: i32, %arg1: i32, %arg2: memref<9xi32, #tpu.memory_space<smem>>, %arg3: memref<9xi32, #tpu.memory_space<smem>>, %arg4: memref<9xi32, #tpu.memory_space<smem>>) -> (i32, i32, i32) {
    %0 = arith.index_cast %arg0 : i32 to index
    %1 = memref.load %arg2[%0] : memref<9xi32, #tpu.memory_space<smem>>
    %2 = arith.index_cast %arg0 : i32 to index
    %3 = memref.load %arg3[%2] : memref<9xi32, #tpu.memory_space<smem>>
    %4 = arith.muli %arg1, %3 : i32
    %c1_i32 = arith.constant 1 : i32
    %5 = arith.subi %c1_i32, %3 : i32
    %c0_i32 = arith.constant 0 : i32
    %6 = arith.muli %c0_i32, %5 : i32
    %7 = arith.addi %4, %6 : i32
    %c0_i32_0 = arith.constant 0 : i32
    %c0_i32_1 = arith.constant 0 : i32
    return %1, %c0_i32_0, %7 : i32, i32, i32
  }
  func.func @transform_4(%arg0: i32, %arg1: i32, %arg2: memref<9xi32, #tpu.memory_space<smem>>, %arg3: memref<9xi32, #tpu.memory_space<smem>>, %arg4: memref<9xi32, #tpu.memory_space<smem>>) -> (i32, i32, i32) {
    %0 = arith.index_cast %arg0 : i32 to index
    %1 = memref.load %arg2[%0] : memref<9xi32, #tpu.memory_space<smem>>
    %2 = arith.index_cast %arg0 : i32 to index
    %3 = memref.load %arg3[%2] : memref<9xi32, #tpu.memory_space<smem>>
    %4 = arith.muli %arg1, %3 : i32
    %c1_i32 = arith.constant 1 : i32
    %5 = arith.subi %c1_i32, %3 : i32
    %c0_i32 = arith.constant 0 : i32
    %6 = arith.muli %c0_i32, %5 : i32
    %7 = arith.addi %4, %6 : i32
    %c0_i32_0 = arith.constant 0 : i32
    %c0_i32_1 = arith.constant 0 : i32
    return %1, %7, %c0_i32_0 : i32, i32, i32
  }
  func.func @transform_5(%arg0: i32, %arg1: i32, %arg2: memref<9xi32, #tpu.memory_space<smem>>, %arg3: memref<9xi32, #tpu.memory_space<smem>>, %arg4: memref<9xi32, #tpu.memory_space<smem>>) -> (i32, i32) {
    %c0_i32 = arith.constant 0 : i32
    %c0_i32_0 = arith.constant 0 : i32
    return %arg0, %c0_i32 : i32, i32
  }
}

</mosaic_0001>

<bundles_post_ra>
// kernel: custom-call
= control target key start
LH: loop header
LB: loop body
LE: loop exit
PB: predicated region body
PF: predicated region fallthrough
CT: control target
= control target key end

     0   :  { %s6_s0 = inlined_call_operand.vmem [shape: u32[9], index: 0, kind: output, shape index: {}]  }

// kernel: phimoe_sparse_moe_block.1
= control target key start
LH: loop header
LB: loop body
LE: loop exit
PB: predicated region body
PF: predicated region fallthrough
CT: control target
= control target key end

     0   :  { %s1396_s0 = inlined_call_operand.vmem [shape: s32[9], index: 0, kind: input, shape index: {}]   ;;  %s1397_s3 = inlined_call_operand.vmem [shape: bf16[288,64], index: 3, kind: input, shape index: {}]   ;;  %s1398_s4 = inlined_call_operand.vmem [shape: f32[288,1], index: 4, kind: input, shape index: {}]   ;;  %s1399_s5 = inlined_call_operand.vmem [shape: bf16[8,64,128], index: 5, kind: input, shape index: {}]   ;;  %s1400_s6 = inlined_call_operand.vmem [shape: bf16[8,64,128], index: 6, kind: input, shape index: {}]   ;;  %s1401_s7 = inlined_call_operand.vmem [shape: bf16[8,128,64], index: 7, kind: input, shape index: {}]   ;;  %s1402_s8 = inlined_call_operand.vmem [shape: bf16[288,64], index: 8, kind: output, shape index: {}]   ;;  %s1403_s1 = inlined_call_operand.vmem [shape: s32[9], index: 1, kind: input, shape index: {}]   ;;  %s1404_s2 = inlined_call_operand.vmem [shape: s32[9], index: 2, kind: input, shape index: {}]  }
   0x1   :  { %s13_s29 = sshll.u32 %s1396_s0, 4  ;;  %s17_s10 = sshll.u32 %s1403_s1, 4  ;;  %s14_s29 = int_to_ptr.vmem [resolvable:$true] %s13_s29  ;;  %s18_s10 = int_to_ptr.vmem [resolvable:$true] %s17_s10 }
   0x2   :  { %s1186_s11 = scalar_lea.vmem %s14_s29, 16  ;;  %p1191_p1 = scmp.lt.s32.totalorder %s14_s29, %s14_s29 }
   0x3   :  { %p1187_p0 = scmp.ne.s32.totalorder %s14_s29, %s1186_s11  ;;  %p1192_p2 = scmp.lt.s32.totalorder %s1186_s11, %s1186_s11 }
   0x5   :  { %p1193_p3 = por %p1192_p2, %p1191_p1 }
   0x7   :  { %p1194_p4 = pnand %p1193_p3, %p1187_p0 }
   0x9   :  { %1197 = shalt.err (!%p1194_p4)  }
   0xa   :  { %s1248_s12 = smov [#allocation4]   ;;  %s1198_s13 = scalar_lea.vmem %s18_s10, 16 }
   0xb   :  { %16 = dma.vmem_to_smem %s14_s29, 16, %s1248_s12, [#allocation3] }
   0xc   :  { %p1199_p5 = scmp.ne.s32.totalorder %s18_s10, %s1198_s13  ;;  %p1203_p6 = scmp.lt.s32.totalorder %s18_s10, %s18_s10 }
   0xd   :  { %p1204_p7 = scmp.lt.s32.totalorder %s1198_s13, %s1198_s13 }
   0xf   :  { %p1205_p8 = por %p1204_p7, %p1203_p6 }
  0x11   :  { %p1206_p9 = pnand %p1205_p8, %p1199_p5 }
  0x13   :  { %1209 = shalt.err (!%p1206_p9)  }
  0x14   :  { %s1249_s0 = smov [#allocation5]   ;;  %s21_s15 = sshll.u32 %s1404_s2, 4  ;;  %s22_s15 = int_to_ptr.vmem [resolvable:$true] %s21_s15 }
  0x15   :  { %20 = dma.vmem_to_smem %s18_s10, 16, %s1249_s0, [#allocation3] }
  0x16   :  { %s1210_s16 = scalar_lea.vmem %s22_s15, 16  ;;  %p1215_p11 = scmp.lt.s32.totalorder %s22_s15, %s22_s15 }
  0x17   :  { %p1211_p10 = scmp.ne.s32.totalorder %s22_s15, %s1210_s16  ;;  %p1216_p12 = scmp.lt.s32.totalorder %s1210_s16, %s1210_s16 }
  0x19   :  { %p1217_p13 = por %p1216_p12, %p1215_p11 }
  0x1b   :  { %p1218_p0 = pnand %p1217_p13, %p1211_p10 }
  0x1d   :  { %1221 = shalt.err (!%p1218_p0)  }
  0x1e   :  { %s1250_s17 = smov [#allocation6]  }
  0x1f   :  { %24 = dma.vmem_to_smem %s22_s15, 16, %s1250_s17, [#allocation3] }
  0x20   :  { %1234 = dma.done.wait [#allocation3], 48 }
  0x21   :  { %1235 = vsyncadd [#allocation3], 4294967248 }
  0x22   :  { %26 = sfence }
  0x23   :  { %s1307_s18 = smov 0   ;;  %s1309_s19 = smov 0  }
  0x24   :  { %s1311_s20 = smov 0  }
  0x25 LB: > { %s44_s2 = sadd.s32 1, %s1242_s19  ;;  %p1002_p1 = scmp.ge.s32.totalorder %s1246_s20, 1  ;;  %s1246_s20 = sphi %s1311_s20, %s32_s20   ;;  %s1242_s19 = sphi %s1309_s19, %s1406_s19   ;;  %s1238_s18 = sphi %s1307_s18, %s1405_s18  }
  0x26   : > { %p46_p2 = scmp.ge.s32.totalorder %s44_s2, 9  ;;  %p319_p3 = scmp.lt.s32.totalorder %s1246_s20, 10 }
  0x28   : > { %s1408_s2 = smov (%p46_p2, %s44_s2), 0  ;;  %p320_p4 = pnand %p1002_p1, %p319_p3 }
  0x29   : > { %s388_s21 = sld [smem:[#allocation6 + %s1238_s18]] (!%p320_p4)  ;;  %s1013_s22 = sshll.u32 (!%p320_p4), %s1238_s18, 2 }
  0x2a   : > { %323 = sbr.rel (%p320_p4) target bundleno = 535 (0x217), region = 40  ;;  %s396_s23 = sld [smem:[#allocation6 + %s1238_s18]] (!%p320_p4) }
  0x2b   : > { %p449_p5 = scmp.lt.s32.totalorder (!%p320_p4), %s1013_s22, 35  ;;  %s404_s24 = sld [smem:[#allocation4 + %s1238_s18]] (!%p320_p4) }
  0x2c   : > { %s418_s25 = sld [smem:[#allocation4 + %s1238_s18]] (!%p320_p4) }
  0x2d   : > { %s432_s26 = sld [smem:[#allocation4 + %s1238_s18]] (!%p320_p4) }
  0x2e   : > { %s464_s28 = sld [smem:[#allocation5 + %s1238_s18]] (!%p320_p4) }
  0x2f   : > { %vm459_vm0 = vcmask 523264   ;;  %v1251_v0 = vmov 0.0   ;;  %s1410_s22 = smov (!%p449_p5, %s1013_s22), 35  ;;  %s1003_s27 = sshll.u32 %s388_s21, 2 }
  0x30   : > { %460 = vst.msk [vmem:[#allocation2] sm:$0xff] %vm459_vm0, %v1251_v0  ;;  %461 = vst.msk [vmem:[#allocation2 + $0x8] sm:$0xff] %vm459_vm0, %v1251_v0  ;;  %p390_p6 = scmp.lt.s32.totalorder %s1003_s27, 35  ;;  %s1005_s29 = sshll.u32 %s396_s23, 2 }
  0x31   : > { %462 = vst.msk [vmem:[#allocation2 + $0x10] sm:$0xff] %vm459_vm0, %v1251_v0  ;;  %463 = vst.msk [vmem:[#allocation2 + $0x18] sm:$0xff] %vm459_vm0, %v1251_v0  ;;  %p398_p7 = scmp.lt.s32.totalorder %s1005_s29, 35  ;;  %p407_p8 = scmp.lt.s32.totalorder %s404_s24, 7 }
  0x32   : > { %s1412_s27 = smov (!%p390_p6, %s1003_s27), 35  ;;  %p421_p9 = scmp.lt.s32.totalorder %s418_s25, 7 }
  0x33   : > { %s1414_s29 = smov (!%p398_p7, %s1005_s29), 35  ;;  %s1004_s30 = sshll.u32 %s1412_s27, 2 }
  0x34   : > { %s1332_s11 = scalar_lea.vmem %s1397_s3, %s1004_s30  ;;  %s1006_s12 = sshll.u32 %s1414_s29, 3 }
  0x35   : > { %s1337_s1 = scalar_lea.vmem %s1398_s4, %s1006_s12  ;;  %p436_p10 = scmp.lt.s32.totalorder %s432_s26, 7 }
  0x36   : > { %s1416_s24 = smov (!%p407_p8, %s404_s24), 7  ;;  %s1418_s25 = smov (!%p421_p9, %s418_s25), 7 }
  0x37   : > { %s1048_s14 = sshll.u32 %s1416_s24, 5  ;;  %s1014_s15 = sshll.u32 %s1410_s22, 2 }
  0x38   : > { %s414_s18 = scalar_lea.vmem %s1399_s5, %s1048_s14  ;;  %s1049_s21 = sshll.u32 %s1418_s25, 5 }
  0x39   : > { %s1345_s30 = scalar_lea.vmem %s1400_s6, %s1049_s21  ;;  %s1350_s10 = scalar_lea.vmem %s1402_s8, %s1014_s15 }
  0x3a   : > { %s1420_s26 = smov (!%p436_p10, %s432_s26), 7  ;;  %p1015_p11 = scmp.le.s32.totalorder %s464_s28, 0 }
  0x3b   : > { %s1050_s12 = sshll.u32 %s1420_s26, 6 }
  0x3c   : > { %s1355_s22 = scalar_lea.vmem %s1401_s7, %s1050_s12  ;;  %468 = sbr.rel (%p1015_p11) target bundleno = 525 (0x20d), region = 48 }
  0x41   : > { %v1152_v1 = vld [vmem:[%s414_s18 + $0x18] sm:$0xff]   ;;  %v1153_v2 = vld [vmem:[%s414_s18 + $0x10] sm:$0xff]   ;;  %v1252_v3 = vmov 0   ;;  %v1154_v4 = vld [vmem:[%s414_s18 + $0x8] sm:$0xff]  }
  0x42   : > { %1150 = vset.pattern.permute.xlu0 %v1252_v3  ;;  %1151 = vset.pattern.permute.xlu1 %v1252_v3  ;;  %v1156_v5 = vld [vmem:[%s1332_s11] sm:$0xff]   ;;  %v1158_v7 = vld [vmem:[%s1345_s30 + $0x18] sm:$0xff]   ;;  %v702_v9 = vld [vmem:[%s1337_s1 + $0x10] sm:$0xff] }
  0x43   : > { %1077 = vmatprep.subr.bf16.mxu1 %v1152_v1  ;;  %1085 = vmatprep.mubr.msk.bf16.mxu1 %vm459_vm0, %v1156_v5  ;;  %v1155_v6 = vld [vmem:[%s414_s18] sm:$0xff]   ;;  %v701_v10 = vld [vmem:[%s1337_s1 + $0x8] sm:$0xff]  ;;  %v703_v11 = vld [vmem:[%s1337_s1 + $0x18] sm:$0xff] }
  0x44   : > { %1078 = vmatpush3.bf16.msra.mxu1 %v1152_v1  ;;  %v700_v8 = vld [vmem:[%s1337_s1] sm:$0xff]  ;;  %v1157_v12 = vld [vmem:[%s1332_s11 + $0x8] sm:$0xff]   ;;  %716 = vperm.xlu1 %1151, %v702_v9   ;;  %v1159_v13 = vld [vmem:[%s1345_s30 + $0x10] sm:$0xff]  }
  0x45   : > { %1079 = vmatprep.subr.bf16.mxu1 %v1153_v2  ;;  %706 = vperm.xlu0 %1150, %v700_v8   ;;  %v1160_v14 = vld [vmem:[%s1345_s30 + $0x8] sm:$0xff]   ;;  %v1161_v15 = vld [vmem:[%s1345_s30] sm:$0xff]   ;;  %v1162_v16 = vld [vmem:[%s1355_s22 + $0x38] sm:$0xff]  }
  0x46   : > { %1101 = vmatprep.subr.bf16.mxu0 %v1162_v16  ;;  %v1163_v17 = vld [vmem:[%s1355_s22 + $0x30] sm:$0xff]   ;;  %v1164_v18 = vld [vmem:[%s1355_s22 + $0x28] sm:$0xff]   ;;  %v1165_v19 = vld [vmem:[%s1355_s22 + $0x20] sm:$0xff]  }
  0x47   : > { %1102 = vmatpush3.bf16.msra.mxu0 %v1162_v16  ;;  %v1166_v20 = vld [vmem:[%s1355_s22 + $0x18] sm:$0xff]   ;;  %v1167_v21 = vld [vmem:[%s1355_s22 + $0x10] sm:$0xff]   ;;  %v1168_v22 = vld [vmem:[%s1355_s22 + $0x8] sm:$0xff]  }
  0x48   : > { %1080 = vmatpush3.bf16.msra.mxu1 %v1153_v2  ;;  %721 = vperm.xlu1 %1151, %v703_v11   ;;  %v1169_v23 = vld [vmem:[%s1355_s22] sm:$0xff]   ;;  %v730_v2 = vld [vmem:[#allocation2 + $0x10] sm:$0xff] }
  0x49   : > { %1081 = vmatprep.subr.bf16.mxu1 %v1154_v4  ;;  %711 = vperm.xlu0 %1150, %v701_v10   ;;  %v729_v10 = vld [vmem:[#allocation2 + $0x8] sm:$0xff] }
  0x4a   : > { %1103 = vmatprep.subr.bf16.mxu0 %v1163_v17 }
  0x4b   : > { %1104 = vmatpush3.bf16.msra.mxu0 %v1163_v17 }
  0x4c   : > { %1082 = vmatpush3.bf16.msra.mxu1 %v1154_v4  ;;  %1105 = vmatprep.subr.bf16.mxu0 %v1164_v18  ;;  %v728_v4 = vld [vmem:[#allocation2] sm:$0xff] }
  0x4d   : > { %1083 = vmatprep.subr.bf16.mxu1 %v1155_v6 }
  0x4f   : > { %1106 = vmatpush3.bf16.msra.mxu0 %v1164_v18 }
  0x50   : > { %1084 = vmatpush3.bf16.msra.mxu1 %v1155_v6  ;;  %1107 = vmatprep.subr.bf16.mxu0 %v1165_v19 }
  0x51   : > { %1089 = vmatprep.subr.bf16.mxu1 %v1158_v7 }
  0x53   : > { %1086 = vmatmul.mubr.msk.bf16.vlgmr.msra.gmra.mxu1 %vm459_vm0, %v1157_v12  ;;  %1108 = vmatpush3.bf16.msra.mxu0 %v1165_v19 }
  0x54   : > { %1090 = vmatpush3.bf16.msra.mxu1 %v1158_v7  ;;  %1097 = vmatprep.mubr.msk.bf16.mxu1 %vm459_vm0, %v1156_v5  ;;  %v731_v7 = vld [vmem:[#allocation2 + $0x18] sm:$0xff] }
  0x55   : > { %1091 = vmatprep.subr.bf16.mxu1 %v1159_v13  ;;  %1109 = vmatprep.subr.bf16.mxu0 %v1166_v20 }
  0x57   : > { %1110 = vmatpush3.bf16.msra.mxu0 %v1166_v20 }
  0x58   : > { %1092 = vmatpush3.bf16.msra.mxu1 %v1159_v13  ;;  %1111 = vmatprep.subr.bf16.mxu0 %v1167_v21 }
  0x59   : > { %1093 = vmatprep.subr.bf16.mxu1 %v1160_v14 }
  0x5b   : > { %1112 = vmatpush3.bf16.msra.mxu0 %v1167_v21 }
  0x5c   : > { %1094 = vmatpush3.bf16.msra.mxu1 %v1160_v14  ;;  %1113 = vmatprep.subr.bf16.mxu0 %v1168_v22 }
  0x5d   : > { %1095 = vmatprep.subr.bf16.mxu1 %v1161_v15 }
  0x5f   : > { %1114 = vmatpush3.bf16.msra.mxu0 %v1168_v22 }
  0x60   : > { %1096 = vmatpush3.bf16.msra.mxu1 %v1161_v15  ;;  %1115 = vmatprep.subr.bf16.mxu0 %v1169_v23 }
  0x63   : > { %1098 = vmatmul.mubr.msk.bf16.vlgmr.msra.gmra.mxu1 %vm459_vm0, %v1157_v12  ;;  %1116 = vmatpush3.bf16.msra.mxu0 %v1169_v23 }
  0xbf   : > { %v717_v43 = vpop.permute.xlu1 %716 }
  0xc0   : > { %v707_v49 = vpop.permute.xlu0 %706 }
  0xc3   : > { %v722_v55 = vpop.permute.xlu1 %721 }
  0xc4   : > { %v712_v59 = vpop.permute.xlu0 %711 }
 0x113   : > { %v1087_v24 = vpop.f32.mrf.mxu1 }
 0x114   : > { %v1032_v25 = vmul.f32 -1.442695, %v1087_v24 }
 0x115   : > { %v580_v26 = vpop.f32.mrf.mxu1 }
 0x116   : > { %1170 = vpow2.f32 %v1032_v25  ;;  %v1030_v27 = vmul.f32 -1.442695, %v580_v26 }
 0x117   : > { %v1088_v28 = vpop.f32.mrf.mxu1 }
 0x118   : > { %1172 = vpow2.f32 %v1030_v27  ;;  %v1033_v29 = vmul.f32 -1.442695, %v1088_v28 }
 0x119   : > { %v583_v30 = vpop.f32.mrf.mxu1 }
 0x11a   : > { %1174 = vpow2.f32 %v1033_v29  ;;  %v1031_v31 = vmul.f32 -1.442695, %v583_v30 }
 0x11c   : > { %1176 = vpow2.f32 %v1031_v31 }
 0x123   : > { %v1171_v32 = vpop.eup %1170  ;;  %v1099_v40 = vpop.f32.mrf.mxu1 }
 0x124   : > { %v682_v33 = vadd.f32 1.0, %v1171_v32 }
 0x125   : > { %v1173_v34 = vpop.eup %1172  ;;  %v653_v41 = vpop.f32.mrf.mxu1 }
 0x126   : > { %v680_v35 = vadd.f32 1.0, %v1173_v34  ;;  %1178 = vrcp.f32 %v682_v33 }
 0x127   : > { %v1175_v36 = vpop.eup %1174  ;;  %v1100_v48 = vpop.f32.mrf.mxu1 }
 0x128   : > { %1180 = vrcp.f32 %v680_v35  ;;  %v683_v37 = vadd.f32 1.0, %v1175_v36 }
 0x129   : > { %v1177_v38 = vpop.eup %1176  ;;  %v656_v57 = vpop.f32.mrf.mxu1 }
 0x12a   : > { %1182 = vrcp.f32 %v683_v37  ;;  %v681_v39 = vadd.f32 1.0, %v1177_v38 }
 0x12c   : > { %1184 = vrcp.f32 %v681_v39 }
 0x133   : > { %v1179_v42 = vpop.eup %1178 }
 0x134   : > { %v694_v47 = vmul.f32 %v1179_v42, %v1087_v24 }
 0x135   : > { %v1181_v44 = vpop.eup %1180 }
 0x136   : > { %v692_v45 = vmul.f32 %v1181_v44, %v580_v26  ;;  %v698_v56 = vmul.f32 %v1099_v40, %v694_v47 }
 0x137   : > { %v1183_v46 = vpop.eup %1182 }
 0x138   : > { %v695_v50 = vmul.f32 %v1183_v46, %v1088_v28  ;;  %v696_v53 = vmul.f32 %v692_v45, %v653_v41  ;;  %v726_v63 = vmul.f32 %v717_v43, %v698_v56 }
 0x139   : > { %v1185_v51 = vpop.eup %1184 }
 0x13a   : > { %v693_v52 = vmul.f32 %v1185_v51, %v583_v30  ;;  %v699_v54 = vmul.f32 %v1100_v48, %v695_v50  ;;  %v724_v61 = vmul.f32 %v707_v49, %v696_v53 }
 0x13c   : > { %v697_v58 = vmul.f32 %v693_v52, %v656_v57  ;;  %v727_v60 = vmul.f32 %v722_v55, %v699_v54 }
 0x13e   : > { %v725_v62 = vmul.f32 %v712_v59, %v697_v58  ;;  %v733_v1 = vpack.c.bf16 %v727_v60, %v726_v63 }
 0x140   : > { %v732_v0 = vpack.c.bf16 %v725_v62, %v724_v61 }
 0x142   : > { %1117 = vmatprep.mubr.bf16.mxu0 %v732_v0 }
 0x143   : > { %1118 = vmatmul.mubr.bf16.vlgmr.msra.gmra.mxu0 %v733_v1 }
 0x203   : > { %v1119_v3 = vpop.f32.mrf.mxu0 }
 0x204   : > { %v833_v5 = vadd.f32 %v1119_v3, %v730_v2 }
 0x205   : > { %v816_v6 = vpop.f32.mrf.mxu0 }
 0x206   : > { %837 = vst.msk [vmem:[#allocation2 + $0x10] sm:$0xff] %vm459_vm0, %v833_v5  ;;  %v831_v8 = vadd.f32 %v816_v6, %v728_v4 }
 0x207   : > { %v1120_v9 = vpop.f32.mrf.mxu0 }
 0x208   : > { %835 = vst.msk [vmem:[#allocation2] sm:$0xff] %vm459_vm0, %v831_v8  ;;  %v834_v11 = vadd.f32 %v1120_v9, %v731_v7 }
 0x209   : > { %v819_v12 = vpop.f32.mrf.mxu0 }
 0x20a   : > { %838 = vst.msk [vmem:[#allocation2 + $0x18] sm:$0xff] %vm459_vm0, %v834_v11  ;;  %v832_v13 = vadd.f32 %v819_v12, %v729_v10 }
 0x20c   : > { %836 = vst.msk [vmem:[#allocation2 + $0x8] sm:$0xff] %vm459_vm0, %v832_v13 }
 0x20d PF: > { %vm862_vm1 = vcmask 519168   ;;  %v844_v16 = vld [vmem:[#allocation2 + $0x10] sm:$0xff] }
 0x20e   : > { %v1053_v19 = vpack.c.bf16 %v844_v16, %v844_v16 }
 0x20f   : > { %v842_v14 = vld [vmem:[#allocation2] sm:$0xff] }
 0x210   : > { %v1051_v17 = vpack.c.bf16 %v842_v14, %v842_v14  ;;  %865 = vst.msk [vmem:[%s1350_s10 + $0x8] sm:$0xf] %vm862_vm1, %v1053_v19 }
 0x211   : > { %v845_v20 = vld [vmem:[#allocation2 + $0x18] sm:$0xff] }
 0x212   : > { %v1054_v21 = vpack.c.bf16 %v845_v20, %v845_v20  ;;  %863 = vst.msk [vmem:[%s1350_s10] sm:$0xf] %vm862_vm1, %v1051_v17 }
 0x213   : > { %v843_v15 = vld [vmem:[#allocation2 + $0x8] sm:$0xff] }
 0x214   : > { %v1052_v18 = vpack.c.bf16 %v843_v15, %v843_v15  ;;  %866 = vst.msk [vmem:[%s1350_s10 + $0xc] sm:$0xf] %vm862_vm1, %v1054_v21 }
 0x216   : > { %864 = vst.msk [vmem:[%s1350_s10 + $0x4] sm:$0xf] %vm862_vm1, %v1052_v18 }
 0x217 PF: > { %s32_s20 = sadd.s32 1, %s1246_s20   ;;  %s1405_s18 = smov %s1242_s19 }
 0x218   : > { %p29_p12 = scmp.ge.s32.totalorder %s32_s20, 11   ;;  %s1406_s19 = smov %s1408_s2 }
 0x21a   :  { %31 = sbr.rel (!%p29_p12) target bundleno = 37 (0x25), region = 94 }

</bundles_post_ra>
